<compile_context>
chip_gen: v6e
topology: v6e:2x2x1
jax: 0.10.0
libtpu: 0.0.40
codegen_flags: <defaults>
</compile_context>

<pallas_src>
import math

import jax
import jax.numpy as jnp
from jax.experimental import pallas as pl
from jax.experimental.pallas import tpu as pltpu


C_IN = 32          # input channels
MAX_TW = 32768     # max pixels per grid step


def _head_kernel(x_ref, ws_ref, bs_ref, wg_ref, bg_ref, gsc_ref, gof_ref,
                 score_ref, geo_ref):
    # x_ref:  (1, 32, TW)
    # ws_ref: (1, 32)   bs_ref: (1, 1)
    # wg_ref: (5, 32)   bg_ref: (5, 1)   gsc_ref/gof_ref: (5, 1)
    # score_ref: (1, 1, TW)   geo_ref: (1, 5, TW)
    x = x_ref[0]                                                  # (32, TW)

    s = jnp.dot(ws_ref[...], x, preferred_element_type=jnp.float32)
    score_ref[0] = jax.nn.sigmoid(s + bs_ref[...])                # (1, TW)

    g = jnp.dot(wg_ref[...], x, preferred_element_type=jnp.float32)
    g = jax.nn.sigmoid(g + bg_ref[...])                           # (5, TW)
    # rows 0..3: loc * 512 ; row 4: angle * pi - pi/2  (== (sig-0.5)*pi)
    geo_ref[0] = g * gsc_ref[...] + gof_ref[...]


def _pixel_tiling(hw, n_batch):
    """Pick a lane-aligned pixel tile width and tile count."""
    n_tiles = pl.cdiv(hw, MAX_TW)
    # Ensure the total grid (N * n_tiles) has >= 2 steps so DMA/compute/
    # writeback overlap and both TCs get work on v7x.
    if n_batch * n_tiles < 2 and hw >= 2 * 128:
        n_tiles = 2
    if n_tiles == 1:
        return hw, 1                      # full map; block == full array dims
    tw = pl.cdiv(hw, n_tiles)
    tw = ((tw + 127) // 128) * 128        # lane-aligned; partial last block OK
    return tw, pl.cdiv(hw, tw)


def east_output_head(x_nchw, w_score, b_score, w_geo, b_geo):
    """x_nchw: (N, 32, H, W).  w_score: (1,32), b_score: (1,).
    w_geo: (5,32) rows [loc0..loc3, angle], b_geo: (5,).
    Returns (score, geo): (N,1,H,W) and (N,5,H,W)."""
    N, C, H, W = x_nchw.shape
    assert C == C_IN
    HW = H * W

    # Native layout: (N, C, H*W) -- a free reshape, no transpose, no pad.
    x3 = x_nchw.reshape(N, C, HW)
    compute_dtype = x3.dtype                      # take producer dtype as-is
    ws2 = w_score.astype(compute_dtype)
    wg2 = w_geo.astype(compute_dtype)
    bs2 = b_score.reshape(1, 1).astype(jnp.float32)
    bg2 = b_geo.reshape(5, 1).astype(jnp.float32)
    gscale = jnp.array([[512.0]] * 4 + [[math.pi]], dtype=jnp.float32)
    goffset = jnp.array([[0.0]] * 4 + [[-math.pi / 2.0]], dtype=jnp.float32)

    TW, n_tiles = _pixel_tiling(HW, N)

    score, geo = pl.pallas_call(
        _head_kernel,
        out_shape=(
            jax.ShapeDtypeStruct((N, 1, HW), jnp.float32),
            jax.ShapeDtypeStruct((N, 5, HW), jnp.float32),
        ),
        grid_spec=pltpu.PrefetchScalarGridSpec(
            num_scalar_prefetch=0,
            grid=(N, n_tiles),
            in_specs=[
                pl.BlockSpec((1, C_IN, TW), lambda n, j: (n, 0, j)),
                pl.BlockSpec((1, C_IN), lambda n, j: (0, 0)),
                pl.BlockSpec((1, 1), lambda n, j: (0, 0)),
                pl.BlockSpec((5, C_IN), lambda n, j: (0, 0)),
                pl.BlockSpec((5, 1), lambda n, j: (0, 0)),
                pl.BlockSpec((5, 1), lambda n, j: (0, 0)),
                pl.BlockSpec((5, 1), lambda n, j: (0, 0)),
            ],
            out_specs=(
                pl.BlockSpec((1, 1, TW), lambda n, j: (n, 0, j)),
                pl.BlockSpec((1, 5, TW), lambda n, j: (n, 0, j)),
            ),
        ),
        compiler_params=pltpu.CompilerParams(
            dimension_semantics=("parallel", "parallel")),
    )(x3, ws2, bs2, wg2, bg2, gscale, goffset)

    # Free reshapes back to NCHW spatial form (contiguous, no slicing).
    return score.reshape(N, 1, H, W), geo.reshape(N, 5, H, W)


def init_params(key):
    """Kaiming-normal (fan_out, relu) weights for the three 1x1 convs, zero bias.

    score head: (1,32).  geo head: rows 0..3 = conv2 (loc), row 4 = conv3 (angle).
    """
    k1, k2, k3 = jax.random.split(key, 3)
    # kaiming_normal_(mode='fan_out'): std = sqrt(2 / fan_out); fan_out =
    # out_channels * 1 * 1 for a 1x1 conv.
    w1 = jax.random.normal(k1, (1, C_IN), jnp.float32) * math.sqrt(2.0 / 1.0)
    w2 = jax.random.normal(k2, (4, C_IN), jnp.float32) * math.sqrt(2.0 / 4.0)
    w3 = jax.random.normal(k3, (1, C_IN), jnp.float32) * math.sqrt(2.0 / 1.0)
    w_score = w1
    b_score = jnp.zeros((1,), jnp.float32)
    w_geo = jnp.concatenate([w2, w3], axis=0)     # (5, 32)
    b_geo = jnp.zeros((5,), jnp.float32)
    return w_score, b_score, w_geo, b_geo


def reference(x_nchw, w_score, b_score, w_geo, b_geo):
    """Plain-JAX reference of the PyTorch forward for sanity checking."""
    N, C, H, W = x_nchw.shape
    xf = x_nchw.astype(jnp.float32).reshape(N, C, H * W)          # (N,32,HW)
    s = jax.nn.sigmoid(jnp.einsum("oc,nch->noh", w_score, xf)
                       + b_score[None, :, None])
    g = jax.nn.sigmoid(jnp.einsum("oc,nch->noh", w_geo, xf)
                       + b_geo[None, :, None])
    loc = g[:, 0:4] * 512.0
    angle = (g[:, 4:5] - 0.5) * math.pi
    geo = jnp.concatenate([loc, angle], axis=1)
    return s.reshape(N, 1, H, W), geo.reshape(N, 5, H, W)


if __name__ == "__main__":
    key = jax.random.PRNGKey(0)
    kx, kp = jax.random.split(key)

    N, H, W = 2, 16, 16
    x = jax.random.normal(kx, (N, C_IN, H, W), jnp.float32)
    w_score, b_score, w_geo, b_geo = init_params(kp)

    score, geo = east_output_head(x, w_score, b_score, w_geo, b_geo)
    jax.block_until_ready((score, geo))

    score_ref, geo_ref = reference(x, w_score, b_score, w_geo, b_geo)
    assert score.shape == (N, 1, H, W)
    assert geo.shape == (N, 5, H, W)
    assert jnp.allclose(score, score_ref, atol=1e-5, rtol=1e-5)
    assert jnp.allclose(geo, geo_ref, atol=1e-4, rtol=1e-5)

    print("KERNEL_OK")
</pallas_src>

<mosaic_0001>
module attributes {stable_mosaic.version = 11 : i64} {
  func.func @_head_kernel(%arg0: i32, %arg1: i32, %arg2: memref<1x32x256xf32, #tpu.memory_space<vmem>>, %arg3: memref<1x32xf32, #tpu.memory_space<vmem>>, %arg4: memref<1x1xf32, #tpu.memory_space<vmem>>, %arg5: memref<5x32xf32, #tpu.memory_space<vmem>>, %arg6: memref<5x1xf32, #tpu.memory_space<vmem>>, %arg7: memref<5x1xf32, #tpu.memory_space<vmem>>, %arg8: memref<5x1xf32, #tpu.memory_space<vmem>>, %arg9: memref<1x1x256xf32, #tpu.memory_space<vmem>>, %arg10: memref<1x5x256xf32, #tpu.memory_space<vmem>>) attributes {dimension_semantics = [#tpu.dimension_semantics<parallel>, #tpu.dimension_semantics<parallel>], iteration_bounds = array<i64: 2, 1>, scalar_prefetch = 0 : i64, scratch_operands = 0 : i64, tpu.core_type = #tpu.core_type<tc>, window_params = [{transform_indices = @transform_0, window_bounds = array<i64: 1, 32, 256>}, {pipeline_mode = #tpu.pipeline_mode<synchronous>, transform_indices = @transform_1, window_bounds = array<i64: 1, 32>}, {pipeline_mode = #tpu.pipeline_mode<synchronous>, transform_indices = @transform_2, window_bounds = array<i64: 1, 1>}, {pipeline_mode = #tpu.pipeline_mode<synchronous>, transform_indices = @transform_3, window_bounds = array<i64: 5, 32>}, {pipeline_mode = #tpu.pipeline_mode<synchronous>, transform_indices = @transform_4, window_bounds = array<i64: 5, 1>}, {pipeline_mode = #tpu.pipeline_mode<synchronous>, transform_indices = @transform_5, window_bounds = array<i64: 5, 1>}, {pipeline_mode = #tpu.pipeline_mode<synchronous>, transform_indices = @transform_6, window_bounds = array<i64: 5, 1>}, {transform_indices = @transform_7, window_bounds = array<i64: 1, 1, 256>}, {transform_indices = @transform_8, window_bounds = array<i64: 1, 5, 256>}]} {
    %c0 = arith.constant 0 : index
    %c0_0 = arith.constant 0 : index
    %c0_1 = arith.constant 0 : index
    %0 = vector.load %arg2[%c0, %c0_0, %c0_1] : memref<1x32x256xf32, #tpu.memory_space<vmem>>, vector<1x32x256xf32>
    %1 = vector.shape_cast %0 : vector<1x32x256xf32> to vector<32x256xf32>
    %c0_2 = arith.constant 0 : index
    %c0_3 = arith.constant 0 : index
    %2 = vector.load %arg3[%c0_2, %c0_3] : memref<1x32xf32, #tpu.memory_space<vmem>>, vector<1x32xf32>
    %cst = arith.constant dense<0.000000e+00> : vector<1x256xf32>
    %3 = tpu.matmul %2, %1, %cst {dimension_numbers = #tpu.dot_dimension_numbers<[1], [0], [0], [1], [0, 0, 1, 1], [], []>} : vector<1x32xf32>, vector<32x256xf32>, vector<1x256xf32> -> vector<1x256xf32>
    %c0_4 = arith.constant 0 : index
    %c0_5 = arith.constant 0 : index
    %4 = vector.load %arg4[%c0_4, %c0_5] : memref<1x1xf32, #tpu.memory_space<vmem>>, vector<1x1xf32>
    %5 = vector.broadcast %4 : vector<1x1xf32> to vector<1x256xf32>
    %6 = arith.addf %3, %5 : vector<1x256xf32>
    %7 = arith.negf %6 : vector<1x256xf32>
    %8 = math.exp %7 : vector<1x256xf32>
    %cst_6 = arith.constant 1.000000e+00 : f32
    %9 = vector.broadcast %cst_6 : f32 to vector<1x256xf32>
    %10 = arith.addf %9, %8 : vector<1x256xf32>
    %11 = arith.divf %9, %10 : vector<1x256xf32>
    %c0_7 = arith.constant 0 : index
    %c0_8 = arith.constant 0 : index
    %c0_9 = arith.constant 0 : index
    %12 = vector.load %arg9[%c0_7, %c0_8, %c0_9] : memref<1x1x256xf32, #tpu.memory_space<vmem>>, vector<1x1x256xf32>
    %13 = vector.shape_cast %12 : vector<1x1x256xf32> to vector<1x256xf32>
    %14 = vector.shape_cast %11 : vector<1x256xf32> to vector<1x1x256xf32>
    tpu.vector_store %arg9[%c0_7, %c0_8, %c0_9], %14 {strides = array<i32>} : memref<1x1x256xf32, #tpu.memory_space<vmem>>, vector<1x1x256xf32>,
    %c0_10 = arith.constant 0 : index
    %c0_11 = arith.constant 0 : index
    %15 = vector.load %arg5[%c0_10, %c0_11] : memref<5x32xf32, #tpu.memory_space<vmem>>, vector<5x32xf32>
    %cst_12 = arith.constant dense<0.000000e+00> : vector<5x256xf32>
    %16 = tpu.matmul %15, %1, %cst_12 {dimension_numbers = #tpu.dot_dimension_numbers<[1], [0], [0], [1], [0, 0, 1, 1], [], []>} : vector<5x32xf32>, vector<32x256xf32>, vector<5x256xf32> -> vector<5x256xf32>
    %c0_13 = arith.constant 0 : index
    %c0_14 = arith.constant 0 : index
    %17 = vector.load %arg6[%c0_13, %c0_14] : memref<5x1xf32, #tpu.memory_space<vmem>>, vector<5x1xf32>
    %18 = vector.broadcast %17 : vector<5x1xf32> to vector<5x256xf32>
    %19 = arith.addf %16, %18 : vector<5x256xf32>
    %20 = arith.negf %19 : vector<5x256xf32>
    %21 = math.exp %20 : vector<5x256xf32>
    %cst_15 = arith.constant 1.000000e+00 : f32
    %22 = vector.broadcast %cst_15 : f32 to vector<5x256xf32>
    %23 = arith.addf %22, %21 : vector<5x256xf32>
    %24 = arith.divf %22, %23 : vector<5x256xf32>
    %c0_16 = arith.constant 0 : index
    %c0_17 = arith.constant 0 : index
    %25 = vector.load %arg7[%c0_16, %c0_17] : memref<5x1xf32, #tpu.memory_space<vmem>>, vector<5x1xf32>
    %26 = vector.broadcast %25 : vector<5x1xf32> to vector<5x256xf32>
    %27 = arith.mulf %24, %26 : vector<5x256xf32>
    %c0_18 = arith.constant 0 : index
    %c0_19 = arith.constant 0 : index
    %28 = vector.load %arg8[%c0_18, %c0_19] : memref<5x1xf32, #tpu.memory_space<vmem>>, vector<5x1xf32>
    %29 = vector.broadcast %28 : vector<5x1xf32> to vector<5x256xf32>
    %30 = arith.addf %27, %29 : vector<5x256xf32>
    %c0_20 = arith.constant 0 : index
    %c0_21 = arith.constant 0 : index
    %c0_22 = arith.constant 0 : index
    %31 = vector.load %arg10[%c0_20, %c0_21, %c0_22] : memref<1x5x256xf32, #tpu.memory_space<vmem>>, vector<1x5x256xf32>
    %32 = vector.shape_cast %31 : vector<1x5x256xf32> to vector<5x256xf32>
    %33 = vector.shape_cast %30 : vector<5x256xf32> to vector<1x5x256xf32>
    tpu.vector_store %arg10[%c0_20, %c0_21, %c0_22], %33 {strides = array<i32>} : memref<1x5x256xf32, #tpu.memory_space<vmem>>, vector<1x5x256xf32>,
    return
  }
  func.func @transform_0(%arg0: i32, %arg1: i32) -> (i32, i32, i32) {
    %c0_i32 = arith.constant 0 : i32
    %c0_i32_0 = arith.constant 0 : i32
    return %arg0, %c0_i32, %arg1 : i32, i32, i32
  }
  func.func @transform_1(%arg0: i32, %arg1: i32) -> (i32, i32) {
    %c0_i32 = arith.constant 0 : i32
    %c0_i32_0 = arith.constant 0 : i32
    %c0_i32_1 = arith.constant 0 : i32
    return %c0_i32, %c0_i32_0 : i32, i32
  }
  func.func @transform_2(%arg0: i32, %arg1: i32) -> (i32, i32) {
    %c0_i32 = arith.constant 0 : i32
    %c0_i32_0 = arith.constant 0 : i32
    %c0_i32_1 = arith.constant 0 : i32
    return %c0_i32, %c0_i32_0 : i32, i32
  }
  func.func @transform_3(%arg0: i32, %arg1: i32) -> (i32, i32) {
    %c0_i32 = arith.constant 0 : i32
    %c0_i32_0 = arith.constant 0 : i32
    %c0_i32_1 = arith.constant 0 : i32
    return %c0_i32, %c0_i32_0 : i32, i32
  }
  func.func @transform_4(%arg0: i32, %arg1: i32) -> (i32, i32) {
    %c0_i32 = arith.constant 0 : i32
    %c0_i32_0 = arith.constant 0 : i32
    %c0_i32_1 = arith.constant 0 : i32
    return %c0_i32, %c0_i32_0 : i32, i32
  }
  func.func @transform_5(%arg0: i32, %arg1: i32) -> (i32, i32) {
    %c0_i32 = arith.constant 0 : i32
    %c0_i32_0 = arith.constant 0 : i32
    %c0_i32_1 = arith.constant 0 : i32
    return %c0_i32, %c0_i32_0 : i32, i32
  }
  func.func @transform_6(%arg0: i32, %arg1: i32) -> (i32, i32) {
    %c0_i32 = arith.constant 0 : i32
    %c0_i32_0 = arith.constant 0 : i32
    %c0_i32_1 = arith.constant 0 : i32
    return %c0_i32, %c0_i32_0 : i32, i32
  }
  func.func @transform_7(%arg0: i32, %arg1: i32) -> (i32, i32, i32) {
    %c0_i32 = arith.constant 0 : i32
    %c0_i32_0 = arith.constant 0 : i32
    return %arg0, %c0_i32, %arg1 : i32, i32, i32
  }
  func.func @transform_8(%arg0: i32, %arg1: i32) -> (i32, i32, i32) {
    %c0_i32 = arith.constant 0 : i32
    %c0_i32_0 = arith.constant 0 : i32
    return %arg0, %c0_i32, %arg1 : i32, i32, i32
  }
}

</mosaic_0001>

<bundles_post_ra>
// kernel: tpu_custom_call.1
= control target key start
LH: loop header
LB: loop body
LE: loop exit
PB: predicated region body
PF: predicated region fallthrough
CT: control target
= control target key end

     0   :  { %s1196_s0 = inlined_call_operand.hbm [shape: f32[2,32,256], index: 0, kind: input, shape index: {}]   ;;  %s1197_s1 = inlined_call_operand.vmem [shape: f32[1,32], index: 1, kind: input, shape index: {}]   ;;  %s1198_s2 = inlined_call_operand.<no memory space> [shape: f32[1,1], index: 2, kind: input, shape index: {}]   ;;  %s1199_s3 = inlined_call_operand.vmem [shape: f32[5,32], index: 3, kind: input, shape index: {}]   ;;  %s1200_s4 = inlined_call_operand.vmem [shape: f32[5,1], index: 4, kind: input, shape index: {}]   ;;  %s1201_s5 = inlined_call_operand.vmem [shape: f32[5,1], index: 5, kind: input, shape index: {}]   ;;  %s1202_s6 = inlined_call_operand.vmem [shape: f32[5,1], index: 6, kind: input, shape index: {}]   ;;  %s1203_s7 = inlined_call_operand.hbm [shape: f32[2,1,256], index: 7, kind: output, shape index: {0}]   ;;  %s1204_s8 = inlined_call_operand.vmem [shape: f32[2,5,256], index: 8, kind: output, shape index: {1}]  }
   0x1   :  { %v14_v0 = vstv %s1198_s2 }
   0x2   :  { %15 = vst [vmem:[#allocation2] sm:$0x1] %v14_v0 }
   0x3   :  { %16 = vsyncpa [#allocation4], 0 }
   0x4   :  { %18 = vsyncpa [#allocation4 + $0x1], 0 }
   0x5   :  { %19 = vsyncpa [#allocation5], 0 }
   0x6   :  { %21 = vsyncpa [#allocation5 + $0x1], 0  ;;  %s1037_s29 = smov 0   ;;  %s1039_s30 = smov 0  }
   0x7   :  { %s1041_s9 = smov 0   ;;  %s1043_s10 = smov 0  }
   0x8   :  { %s1045_s11 = smov 0   ;;  %s1047_s12 = smov 0  }
   0x9 LB: > { %s761_s2 = sadd.s32 4294967295, %s980_s12   ;;  %s762_s13 = sadd.s32 4294967294, %s980_s12   ;;  %s980_s12 = sphi %s1047_s12, %s27_s12   ;;  %s976_s11 = sphi %s1045_s11, %s1218_s11   ;;  %s972_s10 = sphi %s1043_s10, %s1217_s10   ;;  %s968_s9 = sphi %s1041_s9, %s1216_s9   ;;  %s964_s30 = sphi %s1039_s30, %s1215_s30   ;;  %s960_s29 = sphi %s1037_s29, %s1214_s29  }
   0xa   : > { %s39_s14 = sadd.s32 1, %s976_s11  ;;  %s48_s15 = sadd.s32 1, %s968_s9 }
   0xb   : > { %p41_p0 = scmp.ge.s32.totalorder %s39_s14, 2  ;;  %p55_p1 = scmp.ne.s32.totalorder %s968_s9, %s964_s30 }
   0xc   : > { %p56_p2 = scmp.eq.s32.totalorder %s980_s12, 0  ;;  %p61_p3 = scmp.ne.s32.totalorder %s964_s30, %s960_s29 }
   0xd   : > { %s1220_s14 = smov (%p41_p0, %s39_s14), 0  ;;  %p62_p5 = scmp.eq.s32.totalorder %s761_s2, 0 }
   0xe   : > { %1206 = sst [smem:[#allocation9_spill]] %s1220_s14  ;;  %p1078_p4 = por %p56_p2, %p55_p1 }
   0xf   : > { %s43_s17 = ssub.s32 %s976_s11, %s1220_s14  ;;  %p213_p6 = scmp.eq.s32.totalorder %s761_s2, 1 }
  0x10   : > { %p46_p7 = scmp.eq.s32.totalorder %s43_s17, 0  ;;  %p1084_p8 = por %p62_p5, %p61_p3 }
  0x11   : > { %p1088_p9 = por %p213_p6, %p55_p1  ;;  %p219_p10 = scmp.eq.s32.totalorder %s762_s13, 1 }
  0x12   : > { %s1093_s20 = scalar_select %p46_p7, %s968_s9, %s48_s15  }
  0x13   : > { %p1095_p11 = por %p219_p10, %p61_p3  ;;  %p799_p13 = scmp.lt.s32.totalorder %s980_s12, 2 }
  0x14   : > { %s285_s22 = sand.u32 1, %s968_s9   ;;  %s784_s24 = sshll.u32 %s976_s11, 10 }
  0x15   : > { %s765_s23 = sshll.u32 %s285_s22, 6  ;;  %s297_s27 = scalar_lea.hbm %s1196_s0, %s784_s24 }
  0x16   : > { %s289_s28 = scalar_lea.vmem [#allocation3], %s765_s23  ;;  %p1108_p0 = pnand %p799_p13, %p1078_p4 }
  0x17   : > { %s298_s2 = sshll.u32 %s289_s28, 4  ;;  %p768_p1 = scmp.ge.s32.totalorder %s980_s12, 1  ;;  %s299_s2 = int_to_ptr.vmem [resolvable:$true] %s298_s2 }
  0x18   : > { %s286_s15 = scalar_lea.sflag [#allocation4], %s285_s22  ;;  %p874_p2 = pneg %p1108_p0 }
  0x19   : > { %s885_s17 = scalar_lea.vmem %s299_s2, 1024  ;;  %s982_s14 = smov [#allocation3]  }
  0x1a   : > { %p886_p3 = scmp.ne.s32.totalorder %s299_s2, %s885_s17  ;;  %s890_s25 = sshll.u32 %s982_s14, 4  ;;  %s891_s25 = int_to_ptr.vmem [resolvable:$false] %s890_s25 }
  0x1b   : > { %s892_s23 = scalar_lea.vmem %s891_s25, 2048  ;;  %p893_p7 = scmp.lt.s32.totalorder %s299_s2, %s891_s25 }
  0x1c   : > { %p888_p5 = pnand %p886_p3, %p874_p2  ;;  %p894_p10 = scmp.lt.s32.totalorder %s892_s23, %s885_s17 }
  0x1e   : > { %p889_p6 = pneg %p888_p5  ;;  %p895_p12 = por %p894_p10, %p893_p7 }
  0x20   : > { %p896_p4 = pnand %p895_p12, %p889_p6 }
  0x22   : > { %899 = shalt.err (!%p896_p4)
}
  0x23   : > { %s983_s16 = smov 256   ;;  %s984_s22 = smov 16  }
  0x24   : > { %794 = dma.hbm_to_vmem [thread:$0]  (!%p1108_p0), %s297_s27, 1024, %s299_s2, %s286_s15, %s983_s16, %s983_s16, %s984_s22  }
  0x25   : > { %p306_p13 = scmp.lt.s32.totalorder %s980_s12, 3 }
  0x27   : > { %p307_p2 = pnand %p768_p1, %p306_p13 }
  0x28   : > { %s1121_s14 = sand.u32 (!%p307_p2), 1, %s964_s30  }
  0x29   : > { %310 = sbr.rel (%p307_p2) target bundleno = 306 (0x132), region = 48  ;;  %s769_s24 = sshll.u32 (!%p307_p2), %s1121_s14, 6 }
  0x2a   : > { %s313_s26 = scalar_lea.sflag (!%p307_p2), [#allocation4], %s1121_s14  ;;  %s316_s28 = scalar_lea.vmem (!%p307_p2), [#allocation3], %s769_s24 }
  0x2e   : > { %951 = dma.done.wait (%p1084_p8), %s313_s26, 1024  }
  0x2f   : > { %953 = vsyncadd (%p1084_p8), %s313_s26, 4294966272  ;;  %v985_v1 = vmov 0.0   ;;  %v986_v2 = vmov 0   ;;  %v377_v3 = vld [vmem:[%s316_s28 + $0x38] sm:$0xff]  ;;  %v376_v4 = vld [vmem:[%s316_s28 + $0x30] sm:$0xff]  ;;  %vm389_vm0 = vcmask 261120   ;;  %v385_v17 = vlaneseq }
  0x30   : > { %457 = vmatprep.mubr.f32.mxu0 %v985_v1  ;;  %573 = vmatprep.mubr.f32.mxu1 %v985_v1  ;;  %v375_v5 = vld [vmem:[%s316_s28 + $0x28] sm:$0xff]  ;;  %v374_v6 = vld [vmem:[%s316_s28 + $0x20] sm:$0xff]  ;;  %v373_v7 = vld [vmem:[%s316_s28 + $0x18] sm:$0xff]  ;;  %p361_p8 = scmp.lt.s32.totalorder %s972_s10, 1  ;;  %v987_v43 = vmov 1966171168  }
  0x31   : > { %854 = vset.pattern.permute.xlu0 %v986_v2  ;;  %855 = vset.pattern.permute.xlu1 %v986_v2  ;;  %v372_v8 = vld [vmem:[%s316_s28 + $0x10] sm:$0xff]  ;;  %v371_v9 = vld [vmem:[%s316_s28 + $0x8] sm:$0xff]  ;;  %v370_v10 = vld [vmem:[%s316_s28] sm:$0xff]  ;;  %v386_v18 = vshrl.u32 %v385_v17, 7  ;;  %v480_v44 = vunpack.c.l.s4 %v987_v43  ;;  %s770_s26 = sshll.u32 %s1121_s14, 1  ;;  %s786_s13 = sshll.u32 %s972_s10, 5 }
  0x32   : > { %417 = vmatprep.subr.mxu0 %v377_v3  ;;  %533 = vmatprep.subr.mxu1 %v377_v3  ;;  %v378_v11 = vld [vmem:[%s1197_s1] sm:$0x1]  ;;  %s362_s24 = scalar_select %p361_p8, %s972_s10, 1  ;;  %vm496_vm1 = vcmp.lt.s32.totalorder %v385_v17, 256 }
  0x33   : > { %418 = vmatpush1.msra.mxu0 %v376_v4  ;;  %534 = vmatpush1.msra.mxu1 %v376_v4  ;;  %v499_v12 = vld [vmem:[%s1199_s3] sm:$0x1f]  ;;  %v387_v20 = vsub.s32 0, %v386_v18  ;;  %v481_v46 = vunpack.c.0.s8 %v480_v44  ;;  %s346_s15 = scalar_lea.vmem [#allocation6], %s770_s26  ;;  %s1154_s16 = scalar_lea.hbm %s1203_s7, %s786_s13 }
  0x34   : > { %419 = vmatprep.subr.mxu0 %v375_v5  ;;  %535 = vmatprep.subr.mxu1 %v375_v5  ;;  %v379_v13 = vld [vmem:[#allocation2] sm:$0x1]  ;;  %s785_s28 = sshll.u32 %s362_s24, 4  ;;  %s636_s17 = sshll.u32 %s346_s15, 4  ;;  %s637_s17 = int_to_ptr.vmem [resolvable:$true] %s636_s17 }
  0x35   : > { %420 = vmatpush1.msra.mxu0 %v374_v6  ;;  %536 = vmatpush1.msra.mxu1 %v374_v6  ;;  %v592_v14 = vld [vmem:[%s1201_s5] sm:$0x1f]  ;;  %v484_v49 = vsub.s32 %v481_v46, %v386_v18  ;;  %s368_s2 = scalar_lea.vmem %s1204_s8, %s785_s28  ;;  %s611_s22 = scalar_lea.sflag [#allocation5], %s1121_s14 }
  0x36   : > { %421 = vmatprep.subr.mxu0 %v373_v7  ;;  %537 = vmatprep.subr.mxu1 %v373_v7  ;;  %v500_v15 = vld [vmem:[%s1200_s4] sm:$0x1f]  ;;  %s900_s24 = scalar_lea.vmem %s637_s17, 32  ;;  %s988_s10 = smov [#allocation6]  }
  0x37   : > { %422 = vmatpush1.msra.mxu0 %v372_v8  ;;  %538 = vmatpush1.msra.mxu1 %v372_v8  ;;  %v600_v16 = vld [vmem:[%s1202_s6] sm:$0x1f]  ;;  %p901_p12 = scmp.ne.s32.totalorder %s637_s17, %s900_s24  ;;  %s904_s26 = sshll.u32 %s988_s10, 4  ;;  %s905_s26 = int_to_ptr.vmem [resolvable:$false] %s904_s26 }
  0x38   : > { %423 = vmatprep.subr.mxu0 %v371_v9  ;;  %539 = vmatprep.subr.mxu1 %v371_v9  ;;  %s906_s28 = scalar_lea.vmem %s905_s26, 64  ;;  %p907_p3 = scmp.lt.s32.totalorder %s637_s17, %s905_s26 }
  0x39   : > { %424 = vmatpush1.msra.mxu0 %v370_v10  ;;  %540 = vmatpush1.msra.mxu1 %v370_v10  ;;  %p902_p0 = pnand %p901_p12, %p1088_p9  ;;  %p908_p5 = scmp.lt.s32.totalorder %s906_s28, %s900_s24 }
  0x3a   : > { %773 = vmatmul.mubr.msk.f32.vlgmr.msra.gmra.mxu0 %vm389_vm0, %v378_v11  ;;  %776 = vmatmul.mubr.msk.f32.vlgmr.msra.gmra.mxu1 %vm389_vm0, %v499_v12 }
  0x3b   : > { %382 = vperm.xlu0 %854, %v379_v13   ;;  %595 = vperm.xlu1 %855, %v592_v14   ;;  %p903_p1 = pneg %p902_p0  ;;  %p909_p6 = por %p908_p5, %p907_p3 }
  0x3d   : > { %p910_p7 = pnand %p909_p6, %p903_p1 }
  0x3f   : > { %503 = vperm.xlu0 %854, %v500_v15   ;;  %603 = vperm.xlu1 %855, %v600_v16  }
  0xb6   : > { %v383_v19 = vpop.permute.xlu0 %382  ;;  %v596_v45 = vpop.permute.xlu1 %595 }
  0xb7   : > { %v388_v21 = vrot.slane %v383_v19, %v387_v20 }
  0xba   : > { %v504_v22 = vpop.permute.xlu0 %503  ;;  %v604_v50 = vpop.permute.xlu1 %603 }
  0xfa   : > { %v459_v23 = vpop.f32.mrf.mxu0  ;;  %v575_v24 = vpop.f32.mrf.mxu1 }
  0xfb   : > { %v460_v25 = vadd.f32 %v459_v23, %v388_v21  ;;  %v576_v26 = vadd.f32 %v575_v24, %v504_v22 }
  0xfc   : > { %v461_v27 = vpop.f32.mrf.mxu0  ;;  %v577_v28 = vpop.f32.mrf.mxu1 }
  0xfd   : > { %v774_v29 = vmul.f32 -1.442695, %v460_v25  ;;  %v777_v30 = vmul.f32 -1.442695, %v576_v26  ;;  %v462_v31 = vadd.f32 %v461_v27, %v388_v21  ;;  %v578_v32 = vadd.f32 %v577_v28, %v504_v22 }
  0xff   : > { %856 = vpow2.f32 %v774_v29  ;;  %v775_v33 = vmul.f32 -1.442695, %v462_v31  ;;  %v778_v34 = vmul.f32 -1.442695, %v578_v32 }
 0x100   : > { %858 = vpow2.f32 %v777_v30 }
 0x101   : > { %860 = vpow2.f32 %v775_v33 }
 0x102   : > { %862 = vpow2.f32 %v778_v34 }
 0x10c   : > { %v857_v35 = vpop.eup %856 }
 0x10d   : > { %v859_v36 = vpop.eup %858  ;;  %v470_v37 = vadd.f32 1.0, %v857_v35 }
 0x10e   : > { %v861_v38 = vpop.eup %860  ;;  %v586_v39 = vadd.f32 1.0, %v859_v36 }
 0x10f   : > { %v863_v40 = vpop.eup %862  ;;  %864 = vrcp.f32 %v470_v37  ;;  %v471_v41 = vadd.f32 1.0, %v861_v38 }
 0x110   : > { %866 = vrcp.f32 %v586_v39  ;;  %v587_v42 = vadd.f32 1.0, %v863_v40 }
 0x111   : > { %868 = vrcp.f32 %v471_v41 }
 0x112   : > { %870 = vrcp.f32 %v587_v42 }
 0x11c   : > { %v865_v47 = vpop.eup %864 }
 0x11d   : > { %v867_v48 = vpop.eup %866 }
 0x11e   : > { %v869_v51 = vpop.eup %868  ;;  %v598_v52 = vmul.f32 %v867_v48, %v596_v45 }
 0x11f   : > { %v871_v53 = vpop.eup %870  ;;  %v478_v54 = vcombine.low %v865_v47, %v869_v51 }
 0x120   : > { %v599_v55 = vmul.f32 %v871_v53, %v596_v45  ;;  %v606_v56 = vadd.f32 %v604_v50, %v598_v52 }
 0x121   : > { %v485_v57 = vrot.slane %v478_v54, %v484_v49 }
 0x122   : > { %v607_v58 = vadd.f32 %v604_v50, %v599_v55  ;;  %608 = vst [vmem:[%s368_s2] sm:$0x1f] %v606_v56 }
 0x123   : > { %v492_v59 = vrot.slane %v485_v57, %v484_v49 }
 0x124   : > { %609 = vst [vmem:[%s368_s2 + $0x8] sm:$0x1f] %v607_v58 }
 0x125   : > { %498 = vst.msk [vmem:[%s346_s15] sm:$0x3] %vm496_vm1, %v492_v59 }
 0x126   : > { %913 = shalt.err (!%p910_p7)
}
 0x127   : > { %s914_s18 = scalar_lea.hbm %s1154_s16, 32  ;;  %s918_s2 = scalar_lea.hbm %s1203_s7, 64 }
 0x128   : > { %p915_p10 = scmp.ne.s32.totalorder %s1154_s16, %s914_s18  ;;  %p919_p2 = scmp.lt.s32.totalorder %s1154_s16, %s1203_s7 }
 0x129   : > { %p920_p8 = scmp.lt.s32.totalorder %s918_s2, %s914_s18 }
 0x12a   : > { %p916_p4 = pnand %p915_p10, %p1088_p9 }
 0x12b   : > { %p921_p12 = por %p920_p8, %p919_p2 }
 0x12c   : > { %p917_p13 = pneg %p916_p4 }
 0x12e   : > { %p922_p0 = pnand %p921_p12, %p917_p13 }
 0x130   : > { %925 = shalt.err (!%p922_p0)
}
 0x131   : > { %789 = dma.vmem_to_hbm [thread:$0]  (%p1088_p9), %s637_s17, 32, %s1154_s16, %s611_s22  }
 0x132 PF: > { %s652_s25 = sand.u32 1, %s960_s29   ;;  %p1212_p1 = scmp.ge.s32.totalorder %s980_s12, 2 }
 0x133   : > { %s653_s23 = scalar_lea.sflag [#allocation5], %s652_s25 }
 0x134   : > { %p796_p3 = pnand %p1212_p1, %p1095_p11 }
 0x136   : > { %p797_p5 = pneg %p796_p3 }
 0x138   : > { %955 = dma.done.wait (%p797_p5), %s653_s23, 32  }
 0x139   : > { %957 = vsyncadd (%p797_p5), %s653_s23, 4294967264  ;;  %s27_s12 = sadd.s32 1, %s980_s12   ;;  %s1213_s19 = sld [smem:[#allocation9_spill]] }
 0x13a   : > { %p24_p6 = scmp.ge.s32.totalorder %s27_s12, 4   ;;  %s1214_s29 = smov %s964_s30 }
 0x13b   : > { %s1215_s30 = smov %s968_s9  ;;  %s1216_s9 = smov %s1093_s20 }
 0x13c   : > { %s1217_s10 = smov %s976_s11  ;;  %26 = sbr.rel (!%p24_p6) target bundleno = 9 (0x9), region = 105 }
 0x13f   : > { %s1218_s11 = smov %s1213_s19 }
 0x141   :  { %670 = vsyncpa [#allocation4], 1 }
 0x142   :  { %672 = vsyncpa [#allocation4 + $0x1], 1 }
 0x143   :  { %673 = vsyncpa [#allocation5], 1 }
 0x144   :  { %675 = vsyncpa [#allocation5 + $0x1], 1 }

</bundles_post_ra>
